<compile_context>
chip_gen: v5e
topology: v5e:2x2
jax: 0.10.0
libtpu: 0.0.40
codegen_flags: <defaults>
</compile_context>

<pallas_src>
import functools

import jax
import jax.numpy as jnp
from jax.experimental import pallas as pl
from jax.experimental.pallas import tpu as pltpu

LANE = 128
SUBLANE = 8


def _round_up(x: int, m: int) -> int:
    return (x + m - 1) // m * m


def _device_kind() -> str:
    try:
        return jax.devices()[0].device_kind.lower()
    except Exception:
        return ""


def _num_tensorcores(kind: str) -> int:
    """Chips exposing 2 TensorCores behind one device (megacore / v7x)."""
    return 2 if any(s in kind for s in ("v4", "v5p", "v7", "7x")) else 1


def _has_bf16_vpu(kind: str) -> bool:
    """bf16 VALU/EUP exists on v6e and newer; v5e/v4 promote to f32."""
    return any(s in kind for s in ("v6", "v7", "7x"))


def _vmem_capacity_bytes(kind: str) -> int:
    cap = 0
    try:
        cap = int(getattr(pltpu.get_tpu_info(), "vmem_capacity_bytes", 0) or 0)
    except Exception:
        cap = 0
    if cap <= 0:
        # Fallback: be generous only on chips we positively know have 128 MiB.
        cap = (128 * 1024 * 1024
               if any(s in kind for s in ("v4", "v5", "v6"))
               else 64 * 1024 * 1024)
    if ("v7" in kind) or ("7x" in kind):
        cap = min(cap, 64 * 1024 * 1024)   # v7x: 64 MiB per TensorCore
    return cap


def _dice_partial_kernel(inp_ref, tgt_ref, inter_ref, pin_ref, ptg_ref,
                         *, num_channels: int, compute_dtype):
    """Grid = (P parallel slices, T spatial tiles per slice).

    inp_ref / tgt_ref : (N, C, tile) VMEM tiles (native dtype).
    inter/pin/ptg_ref : (1, N, C) f32 accumulators, resident across the
                        "arbitrary" tile axis (one block per parallel slice).
    """
    t = pl.program_id(1)

    @pl.when(t == 0)
    def _init():
        inter_ref[...] = jnp.zeros_like(inter_ref)
        pin_ref[...] = jnp.zeros_like(pin_ref)
        ptg_ref[...] = jnp.zeros_like(ptg_ref)

    x = inp_ref[...].astype(compute_dtype)    # (N, C, tile)
    tg = tgt_ref[...].astype(compute_dtype)   # (N, C, tile)

    if num_channels > 1:
        # Softmax along the channel (sublane) axis, per pixel.  One exact
        # reciprocal per pixel + one multiply per element instead of a
        # per-element divide.
        m = jnp.max(x, axis=1, keepdims=True)
        e = jnp.exp(x - m)
        s = jnp.sum(e, axis=1, keepdims=True).astype(jnp.float32)
        r = pl.reciprocal(s, approx=False).astype(compute_dtype)
        p = e * r
    else:
        p = jax.nn.sigmoid(x)

    # No padding mask here: zero-padded spatial columns contribute a known
    # constant to sum(p) that is subtracted once in the finalize step.
    # Partial sums always accumulate in f32, whatever the compute dtype.
    inter_ref[...] += jnp.sum((p * tg).astype(jnp.float32), axis=-1)[None]
    pin_ref[...] += jnp.sum(p.astype(jnp.float32), axis=-1)[None]
    ptg_ref[...] += jnp.sum(tg.astype(jnp.float32), axis=-1)[None]


def dice_loss(inputs, targets, smooth: float = 1.0, *, max_tile_cap: int = 16384):
    """JAX/Pallas equivalent of DiceLoss.forward(inputs, targets).

    inputs, targets: (N, C, *spatial) arrays (NCHW-like, matching PyTorch).
    Returns a scalar float32 loss.
    """
    N, C = int(inputs.shape[0]), int(inputs.shape[1])
    HW = 1
    for d in inputs.shape[2:]:
        HW *= int(d)

    # Keep native dtypes (bf16 inputs halve HBM traffic); promote in-kernel.
    x = inputs.reshape(N, C, HW)
    t = targets.reshape(N, C, HW)

    kind = _device_kind()
    num_tc = _num_tensorcores(kind)
    vmem_cap = _vmem_capacity_bytes(kind)

    # Generation-aware VMEM knobs: generous on 128 MiB chips (v5e/v6e),
    # conservative on 64 MiB-per-TC v7x.
    vmem_limit = min(96 << 20, max(32 << 20, (vmem_cap * 3) // 4))
    pipeline_budget = max(8 << 20, min(40 << 20, vmem_limit // 2 - (4 << 20)))

    compute_in_bf16 = (inputs.dtype == jnp.bfloat16) and _has_bf16_vpu(kind)
    compute_dtype = jnp.bfloat16 if compute_in_bf16 else jnp.float32
    compute_itemsize = 2 if compute_in_bf16 else 4
    in_itemsize = int(jnp.dtype(inputs.dtype).itemsize)

    # ---- spatial tile selection (lane-aligned, VMEM-budgeted) ----
    c_pad = _round_up(C, SUBLANE)
    # Per spatial column: 2 inputs x 2 pipeline buffers in native dtype, plus
    # ~5 live elementwise temporaries in the compute dtype (single-buffered).
    bytes_per_col = N * c_pad * (2 * 2 * in_itemsize + 5 * compute_itemsize)
    max_tile = (pipeline_budget // bytes_per_col) // LANE * LANE
    max_tile = max(LANE, min(max_tile, int(max_tile_cap)))

    hw_lane = _round_up(HW, LANE)
    if hw_lane <= max_tile:
        num_tiles, tile = 1, hw_lane
    else:
        # Pick (num_tiles, tile) so num_tiles*tile barely exceeds hw_lane
        # (never pad up to a huge tile).  On 2-TC chips prefer an even tile
        # count by shrinking tiles, not by adding a padded tile.
        want_even = num_tc >= 2
        base = -(-hw_lane // max_tile)
        best = None
        for nt in range(base, base + 8):
            if want_even and nt > 1 and (nt % 2):
                continue
            cand_tile = _round_up(-(-hw_lane // nt), LANE)
            waste = nt * cand_tile - hw_lane
            if best is None or waste < best[2]:
                best = (nt, cand_tile, waste)
            if waste == 0:
                break
        num_tiles, tile, _ = best
    hw_pad = num_tiles * tile

    P = 2 if (num_tc >= 2 and num_tiles >= 2 and num_tiles % 2 == 0) else 1
    tiles_per_slice = num_tiles // P

    pad = hw_pad - HW
    if pad:
        # Zero fill is required: the finalize correction below assumes
        # softmax(all-zero column) = 1/C and sigmoid(0) = 0.5 exactly.
        x = jnp.pad(x, ((0, 0), (0, 0), (0, pad)))
        t = jnp.pad(t, ((0, 0), (0, 0), (0, pad)))

    def _call(cdtype):
        kernel = functools.partial(_dice_partial_kernel, num_channels=C,
                                   compute_dtype=cdtype)
        acc = jax.ShapeDtypeStruct((P, N, C), jnp.float32)
        return pl.pallas_call(
            kernel,
            out_shape=(acc, acc, acc),
            grid_spec=pltpu.PrefetchScalarGridSpec(
                num_scalar_prefetch=0,
                grid=(P, tiles_per_slice),
                in_specs=[
                    pl.BlockSpec((N, C, tile),
                                 lambda p, j: (0, 0, p * tiles_per_slice + j)),
                    pl.BlockSpec((N, C, tile),
                                 lambda p, j: (0, 0, p * tiles_per_slice + j)),
                ],
                out_specs=[
                    pl.BlockSpec((1, N, C), lambda p, j: (p, 0, 0)),
                    pl.BlockSpec((1, N, C), lambda p, j: (p, 0, 0)),
                    pl.BlockSpec((1, N, C), lambda p, j: (p, 0, 0)),
                ],
            ),
            compiler_params=pltpu.CompilerParams(
                dimension_semantics=("parallel", "arbitrary"),
                vmem_limit_bytes=int(vmem_limit)),
        )(x, t)

    try:
        inter_p, pin_p, ptg_p = jax.block_until_ready(_call(compute_dtype))
    except Exception:
        if compute_dtype == jnp.float32:
            raise
        # bf16 elementwise chain failed to lower on this chip; retry in f32.
        inter_p, pin_p, ptg_p = _call(jnp.float32)

    # ---- tiny finalize in plain JAX (keeps the kernel a pure reduction) ----
    inter = jnp.sum(inter_p, axis=0)   # (N, C)
    pin = jnp.sum(pin_p, axis=0)
    ptg = jnp.sum(ptg_p, axis=0)
    if pad:
        # Zero-padded columns contribute exactly 1/C per channel (softmax of
        # an all-zero logit column after max-subtraction) resp. sigmoid(0)=0.5
        # to sum(p), and 0 to inter / sum(t).  Subtract that known constant
        # here instead of masking every tile in the kernel.
        pin = pin - (pad / C if C > 1 else 0.5 * pad)
    dice_c = (2.0 * inter + smooth) / (pin + ptg + smooth)   # (N, C)
    dice = jnp.mean(jnp.sum(dice_c, axis=1)) / float(C)
    return (1.0 - dice).astype(jnp.float32)


def _dice_loss_ref(inputs, targets, smooth: float = 1.0):
    """Pure-JAX reference mirroring the PyTorch module."""
    N, C = inputs.shape[0], inputs.shape[1]
    if C > 1:
        p = jax.nn.softmax(inputs.astype(jnp.float32), axis=1)
    else:
        p = jax.nn.sigmoid(inputs.astype(jnp.float32))
    p = p.reshape(N, C, -1)
    t = targets.reshape(N, C, -1).astype(jnp.float32)
    dice = 0.0
    for i in range(C):
        inter = jnp.sum(p[:, i] * t[:, i], axis=1)
        dice += (2.0 * inter + smooth) / (
            jnp.sum(p[:, i], axis=1) + jnp.sum(t[:, i], axis=1) + smooth)
    dice = jnp.mean(dice) / float(C)
    return 1.0 - dice


if __name__ == "__main__":
    key = jax.random.PRNGKey(0)

    def _check(inputs, targets, atol, rtol, **kw):
        loss = jax.block_until_ready(dice_loss(inputs, targets, smooth=1.0, **kw))
        ref = jax.block_until_ready(_dice_loss_ref(inputs, targets, smooth=1.0))
        assert bool(jnp.isfinite(loss)), loss
        assert jnp.allclose(loss, ref, atol=atol, rtol=rtol), (loss, ref)

    # Case 1: multi-channel f32, lane-aligned spatial extent, single tile.
    k1, k2, key = jax.random.split(key, 3)
    N, C, H, W = 2, 4, 16, 16
    inputs = jax.random.normal(k1, (N, C, H, W), dtype=jnp.float32)
    labels = jax.random.randint(k2, (N, H, W), 0, C)
    targets = jax.nn.one_hot(labels, C, axis=1).astype(jnp.float32)
    _check(inputs, targets, 1e-5, 1e-5)

    # Case 2: spatial extent not divisible by the tile -> multi-tile grid,
    # 128-padding + finalize correction (forced via a small tile cap).
    k1, k2, key = jax.random.split(key, 3)
    N, C, H, W = 2, 3, 20, 20
    inputs = jax.random.normal(k1, (N, C, H, W), dtype=jnp.float32)
    labels = jax.random.randint(k2, (N, H, W), 0, C)
    targets = jax.nn.one_hot(labels, C, axis=1).astype(jnp.float32)
    _check(inputs, targets, 1e-5, 1e-5, max_tile_cap=256)

    # Case 3: single channel (sigmoid path) with padding correction.
    k1, k2, key = jax.random.split(key, 3)
    N, C, H, W = 2, 1, 20, 20
    inputs = jax.random.normal(k1, (N, C, H, W), dtype=jnp.float32)
    targets = (jax.random.uniform(k2, (N, C, H, W)) > 0.5).astype(jnp.float32)
    _check(inputs, targets, 1e-5, 1e-5, max_tile_cap=256)

    # Case 4: bf16 inputs (bf16 elementwise chain on v6e/v7x, f32 elsewhere).
    k1, k2, key = jax.random.split(key, 3)
    N, C, H, W = 2, 4, 16, 16
    inputs = jax.random.normal(k1, (N, C, H, W), dtype=jnp.float32).astype(jnp.bfloat16)
    labels = jax.random.randint(k2, (N, H, W), 0, C)
    targets = jax.nn.one_hot(labels, C, axis=1).astype(jnp.bfloat16)
    _check(inputs, targets, 2e-2, 2e-2)

    print("KERNEL_OK")
</pallas_src>

<mosaic_0001>
module attributes {stable_mosaic.version = 11 : i64} {
  func.func @_dice_partial_kernel(%arg0: i32, %arg1: i32, %arg2: memref<2x4x256xf32, #tpu.memory_space<vmem>>, %arg3: memref<2x4x256xf32, #tpu.memory_space<vmem>>, %arg4: memref<1x2x4xf32, #tpu.memory_space<vmem>>, %arg5: memref<1x2x4xf32, #tpu.memory_space<vmem>>, %arg6: memref<1x2x4xf32, #tpu.memory_space<vmem>>) attributes {dimension_semantics = [#tpu.dimension_semantics<parallel>, #tpu.dimension_semantics<arbitrary>], iteration_bounds = array<i64: 1, 1>, scalar_prefetch = 0 : i64, scratch_operands = 0 : i64, tpu.core_type = #tpu.core_type<tc>, window_params = [{transform_indices = @transform_0, window_bounds = array<i64: 2, 4, 256>}, {transform_indices = @transform_1, window_bounds = array<i64: 2, 4, 256>}, {transform_indices = @transform_2, window_bounds = array<i64: 1, 2, 4>}, {transform_indices = @transform_3, window_bounds = array<i64: 1, 2, 4>}, {transform_indices = @transform_4, window_bounds = array<i64: 1, 2, 4>}]} {
    %c0_i32 = arith.constant 0 : i32
    %0 = arith.cmpi eq, %arg1, %c0_i32 : i32
    %1 = arith.extui %0 : i1 to i32
    %c0_i32_0 = arith.constant 0 : i32
    %2 = arith.cmpi ne, %1, %c0_i32_0 : i32
    scf.if %2 {
      %cst_28 = arith.constant 0.000000e+00 : f32
      %31 = vector.broadcast %cst_28 : f32 to vector<1x2x4xf32>
      %c0_29 = arith.constant 0 : index
      %c0_30 = arith.constant 0 : index
      %c0_31 = arith.constant 0 : index
      %32 = vector.load %arg4[%c0_29, %c0_30, %c0_31] : memref<1x2x4xf32, #tpu.memory_space<vmem>>, vector<1x2x4xf32>
      tpu.vector_store %arg4[%c0_29, %c0_30, %c0_31], %31 {strides = array<i32>} : memref<1x2x4xf32, #tpu.memory_space<vmem>>, vector<1x2x4xf32>,
      %cst_32 = arith.constant 0.000000e+00 : f32
      %33 = vector.broadcast %cst_32 : f32 to vector<1x2x4xf32>
      %c0_33 = arith.constant 0 : index
      %c0_34 = arith.constant 0 : index
      %c0_35 = arith.constant 0 : index
      %34 = vector.load %arg5[%c0_33, %c0_34, %c0_35] : memref<1x2x4xf32, #tpu.memory_space<vmem>>, vector<1x2x4xf32>
      tpu.vector_store %arg5[%c0_33, %c0_34, %c0_35], %33 {strides = array<i32>} : memref<1x2x4xf32, #tpu.memory_space<vmem>>, vector<1x2x4xf32>,
      %cst_36 = arith.constant 0.000000e+00 : f32
      %35 = vector.broadcast %cst_36 : f32 to vector<1x2x4xf32>
      %c0_37 = arith.constant 0 : index
      %c0_38 = arith.constant 0 : index
      %c0_39 = arith.constant 0 : index
      %36 = vector.load %arg6[%c0_37, %c0_38, %c0_39] : memref<1x2x4xf32, #tpu.memory_space<vmem>>, vector<1x2x4xf32>
      tpu.vector_store %arg6[%c0_37, %c0_38, %c0_39], %35 {strides = array<i32>} : memref<1x2x4xf32, #tpu.memory_space<vmem>>, vector<1x2x4xf32>,
    } else {
    }
    %c0 = arith.constant 0 : index
    %c0_1 = arith.constant 0 : index
    %c0_2 = arith.constant 0 : index
    %3 = vector.load %arg2[%c0, %c0_1, %c0_2] : memref<2x4x256xf32, #tpu.memory_space<vmem>>, vector<2x4x256xf32>
    %c0_3 = arith.constant 0 : index
    %c0_4 = arith.constant 0 : index
    %c0_5 = arith.constant 0 : index
    %4 = vector.load %arg3[%c0_3, %c0_4, %c0_5] : memref<2x4x256xf32, #tpu.memory_space<vmem>>, vector<2x4x256xf32>
    %cst = arith.constant dense<0xFF800000> : vector<2x256xf32>
    %5 = vector.multi_reduction <maximumf>, %3, %cst [1] : vector<2x4x256xf32> to vector<2x256xf32>
    %6 = vector.shape_cast %5 : vector<2x256xf32> to vector<2x1x256xf32>
    %7 = vector.broadcast %6 : vector<2x1x256xf32> to vector<2x4x256xf32>
    %8 = arith.subf %3, %7 : vector<2x4x256xf32>
    %9 = math.exp %8 : vector<2x4x256xf32>
    %cst_6 = arith.constant dense<0.000000e+00> : vector<2x256xf32>
    %10 = vector.multi_reduction <add>, %9, %cst_6 [1] : vector<2x4x256xf32> to vector<2x256xf32>
    %11 = vector.shape_cast %10 : vector<2x256xf32> to vector<2x1x256xf32>
    %12 = tpu.reciprocal %11 : vector<2x1x256xf32> -> vector<2x1x256xf32>
    %13 = vector.broadcast %12 : vector<2x1x256xf32> to vector<2x4x256xf32>
    %14 = arith.mulf %9, %13 : vector<2x4x256xf32>
    %c0_7 = arith.constant 0 : index
    %c0_8 = arith.constant 0 : index
    %c0_9 = arith.constant 0 : index
    %15 = vector.load %arg4[%c0_7, %c0_8, %c0_9] : memref<1x2x4xf32, #tpu.memory_space<vmem>>, vector<1x2x4xf32>
    %16 = arith.mulf %14, %4 : vector<2x4x256xf32>
    %cst_10 = arith.constant dense<0.000000e+00> : vector<2x4xf32>
    %17 = vector.multi_reduction <add>, %16, %cst_10 [2] : vector<2x4x256xf32> to vector<2x4xf32>
    %18 = vector.shape_cast %17 : vector<2x4xf32> to vector<1x2x4xf32>
    %19 = arith.addf %15, %18 : vector<1x2x4xf32>
    %c0_11 = arith.constant 0 : index
    %c0_12 = arith.constant 0 : index
    %c0_13 = arith.constant 0 : index
    %20 = vector.load %arg4[%c0_11, %c0_12, %c0_13] : memref<1x2x4xf32, #tpu.memory_space<vmem>>, vector<1x2x4xf32>
    tpu.vector_store %arg4[%c0_11, %c0_12, %c0_13], %19 {strides = array<i32>} : memref<1x2x4xf32, #tpu.memory_space<vmem>>, vector<1x2x4xf32>,
    %c0_14 = arith.constant 0 : index
    %c0_15 = arith.constant 0 : index
    %c0_16 = arith.constant 0 : index
    %21 = vector.load %arg5[%c0_14, %c0_15, %c0_16] : memref<1x2x4xf32, #tpu.memory_space<vmem>>, vector<1x2x4xf32>
    %cst_17 = arith.constant dense<0.000000e+00> : vector<2x4xf32>
    %22 = vector.multi_reduction <add>, %14, %cst_17 [2] : vector<2x4x256xf32> to vector<2x4xf32>
    %23 = vector.shape_cast %22 : vector<2x4xf32> to vector<1x2x4xf32>
    %24 = arith.addf %21, %23 : vector<1x2x4xf32>
    %c0_18 = arith.constant 0 : index
    %c0_19 = arith.constant 0 : index
    %c0_20 = arith.constant 0 : index
    %25 = vector.load %arg5[%c0_18, %c0_19, %c0_20] : memref<1x2x4xf32, #tpu.memory_space<vmem>>, vector<1x2x4xf32>
    tpu.vector_store %arg5[%c0_18, %c0_19, %c0_20], %24 {strides = array<i32>} : memref<1x2x4xf32, #tpu.memory_space<vmem>>, vector<1x2x4xf32>,
    %c0_21 = arith.constant 0 : index
    %c0_22 = arith.constant 0 : index
    %c0_23 = arith.constant 0 : index
    %26 = vector.load %arg6[%c0_21, %c0_22, %c0_23] : memref<1x2x4xf32, #tpu.memory_space<vmem>>, vector<1x2x4xf32>
    %cst_24 = arith.constant dense<0.000000e+00> : vector<2x4xf32>
    %27 = vector.multi_reduction <add>, %4, %cst_24 [2] : vector<2x4x256xf32> to vector<2x4xf32>
    %28 = vector.shape_cast %27 : vector<2x4xf32> to vector<1x2x4xf32>
    %29 = arith.addf %26, %28 : vector<1x2x4xf32>
    %c0_25 = arith.constant 0 : index
    %c0_26 = arith.constant 0 : index
    %c0_27 = arith.constant 0 : index
    %30 = vector.load %arg6[%c0_25, %c0_26, %c0_27] : memref<1x2x4xf32, #tpu.memory_space<vmem>>, vector<1x2x4xf32>
    tpu.vector_store %arg6[%c0_25, %c0_26, %c0_27], %29 {strides = array<i32>} : memref<1x2x4xf32, #tpu.memory_space<vmem>>, vector<1x2x4xf32>,
    return
  }
  func.func @transform_0(%arg0: i32, %arg1: i32) -> (i32, i32, i32) {
    %c1_i32 = arith.constant 1 : i32
    %0 = arith.muli %arg0, %c1_i32 : i32
    %1 = arith.addi %0, %arg1 : i32
    %c0_i32 = arith.constant 0 : i32
    %c0_i32_0 = arith.constant 0 : i32
    %c0_i32_1 = arith.constant 0 : i32
    return %c0_i32, %c0_i32_0, %1 : i32, i32, i32
  }
  func.func @transform_1(%arg0: i32, %arg1: i32) -> (i32, i32, i32) {
    %c1_i32 = arith.constant 1 : i32
    %0 = arith.muli %arg0, %c1_i32 : i32
    %1 = arith.addi %0, %arg1 : i32
    %c0_i32 = arith.constant 0 : i32
    %c0_i32_0 = arith.constant 0 : i32
    %c0_i32_1 = arith.constant 0 : i32
    return %c0_i32, %c0_i32_0, %1 : i32, i32, i32
  }
  func.func @transform_2(%arg0: i32, %arg1: i32) -> (i32, i32, i32) {
    %c0_i32 = arith.constant 0 : i32
    %c0_i32_0 = arith.constant 0 : i32
    %c0_i32_1 = arith.constant 0 : i32
    return %arg0, %c0_i32, %c0_i32_0 : i32, i32, i32
  }
  func.func @transform_3(%arg0: i32, %arg1: i32) -> (i32, i32, i32) {
    %c0_i32 = arith.constant 0 : i32
    %c0_i32_0 = arith.constant 0 : i32
    %c0_i32_1 = arith.constant 0 : i32
    return %arg0, %c0_i32, %c0_i32_0 : i32, i32, i32
  }
  func.func @transform_4(%arg0: i32, %arg1: i32) -> (i32, i32, i32) {
    %c0_i32 = arith.constant 0 : i32
    %c0_i32_0 = arith.constant 0 : i32
    %c0_i32_1 = arith.constant 0 : i32
    return %arg0, %c0_i32, %c0_i32_0 : i32, i32, i32
  }
}

</mosaic_0001>

<bundles_post_ra>
// kernel: tpu_custom_call.1
= control target key start
LH: loop header
LB: loop body
LE: loop exit
PB: predicated region body
PF: predicated region fallthrough
CT: control target
= control target key end

     0   :  { %10 = vsyncpa [#allocation3], 0  ;;  %s661_s0 = inlined_call_operand.hbm [shape: f32[2,4,256], index: 0, kind: input, shape index: {}]   ;;  %s662_s1 = inlined_call_operand.hbm [shape: f32[2,4,256], index: 1, kind: input, shape index: {}]   ;;  %s663_s2 = inlined_call_operand.hbm [shape: f32[1,2,4], index: 2, kind: output, shape index: {0}]   ;;  %s664_s3 = inlined_call_operand.hbm [shape: f32[1,2,4], index: 3, kind: output, shape index: {1}]   ;;  %s665_s4 = inlined_call_operand.hbm [shape: f32[1,2,4], index: 4, kind: output, shape index: {2}]  }
   0x1   :  { %11 = vsyncpa [#allocation6], 0 }
   0x2   :  { %12 = vsyncpa [#allocation4], 0 }
   0x3   :  { %13 = vsyncpa [#allocation9], 0  ;;  %s22_s17 = sshll.u32 %s661_s0, 4  ;;  %s538_s18 = smov [#allocation2]   ;;  %s23_s17 = int_to_ptr.hbm [resolvable:$true] %s22_s17 }
   0x4   :  { %s24_s19 = sshll.u32 %s538_s18, 4  ;;  %s39_s22 = sshll.u32 %s662_s1, 4  ;;  %s25_s19 = int_to_ptr.vmem [resolvable:$true] %s24_s19  ;;  %s40_s22 = int_to_ptr.hbm [resolvable:$true] %s39_s22 }
   0x5   :  { %s539_s23 = smov 128   ;;  %s540_s24 = smov 8  }
   0x6   :  { %30 = dma.hbm_to_vmem [thread:$0]  %s23_s17, 256, %s25_s19, [#allocation3], %s539_s23, %s539_s23, %s540_s24  }
   0x7   :  { %s541_s25 = smov [#allocation5]  }
   0x8   :  { %s41_s26 = sshll.u32 %s541_s25, 4  ;;  %s42_s26 = int_to_ptr.vmem [resolvable:$true] %s41_s26 }
   0x9   :  { %47 = dma.hbm_to_vmem [thread:$0]  %s40_s22, 256, %s42_s26, [#allocation6], %s539_s23, %s539_s23, %s540_s24  }
   0xa   :  { %530 = dma.done.wait [#allocation3], 256  }
   0xb   :  { %531 = vsyncadd [#allocation3], 4294967040 }
   0xc   :  { %532 = dma.done.wait [#allocation6], 256  }
   0xd   :  { %533 = vsyncadd [#allocation6], 4294967040  ;;  %v68_v0 = vld [vmem:[#allocation2] sm:$0xff]  ;;  %v69_v1 = vld [vmem:[#allocation2 + $0x8] sm:$0xff]  ;;  %vm85_vm0 = vcmask 1043456   ;;  %s543_s0 = smov [#allocation7]  }
   0xe   :  { %74 = vst [vmem:[#allocation1] ss:$2 sm:$0xff] %v68_v0  ;;  %s346_s1 = sshll.u32 %s543_s0, 4  ;;  %s348_s29 = sshll.u32 %s663_s2, 4  ;;  %s347_s1 = int_to_ptr.vmem [resolvable:$true] %s346_s1  ;;  %s349_s29 = int_to_ptr.hbm [resolvable:$true] %s348_s29 }
   0xf   :  { %78 = vst [vmem:[#allocation1 + $0x10] ss:$2 sm:$0xff] %v69_v1  ;;  %s544_s30 = smov [#allocation8]   ;;  %s359_s8 = sshll.u32 %s664_s3, 4  ;;  %s360_s8 = int_to_ptr.hbm [resolvable:$true] %s359_s8 }
  0x10   :  { %s357_s5 = sshll.u32 %s544_s30, 4  ;;  %s545_s2 = smov [#allocation10]   ;;  %s358_s5 = int_to_ptr.vmem [resolvable:$true] %s357_s5 }
  0x11   :  { %s368_s9 = sshll.u32 %s545_s2, 4  ;;  %s370_s12 = sshll.u32 %s665_s4, 4  ;;  %s369_s9 = int_to_ptr.vmem [resolvable:$true] %s368_s9  ;;  %s371_s12 = int_to_ptr.hbm [resolvable:$true] %s370_s12 }
  0x15   :  { %v75_v2 = vld.sshfl [vmem:[#allocation1] sm:$0xff pattern:$0x75316420]  ;;  %v76_v3 = vld.sshfl [vmem:[#allocation1 + $0x8] sm:$0xff pattern:$0x75316420] }
  0x16   :  { %v86_v4 = vsel %vm85_vm0, %v75_v2, -inf  ;;  %v93_v5 = vsel %vm85_vm0, %v76_v3, -inf  ;;  %v79_v6 = vld.sshfl [vmem:[#allocation1 + $0x10] sm:$0xff pattern:$0x75316420] }
  0x17   :  { %v87_v7 = vrot.slane %v86_v4, 4  ;;  %v94_v8 = vrot.slane %v93_v5, 4  ;;  %v80_v9 = vld.sshfl [vmem:[#allocation1 + $0x18] sm:$0xff pattern:$0x75316420]  ;;  %v100_v10 = vsel %vm85_vm0, %v79_v6, -inf }
  0x18   :  { %v101_v11 = vrot.slane %v100_v10, 4  ;;  %v107_v12 = vsel %vm85_vm0, %v80_v9, -inf }
  0x19   :  { %v88_v13 = vmax.f32 %v86_v4, %v87_v7  ;;  %v95_v14 = vmax.f32 %v93_v5, %v94_v8  ;;  %v108_v15 = vrot.slane %v107_v12, 4 }
  0x1a   :  { %v102_v16 = vmax.f32 %v100_v10, %v101_v11 }
  0x1b   :  { %v89_v17 = vrot.slane %v88_v13, 2  ;;  %v96_v18 = vrot.slane %v95_v14, 2  ;;  %v109_v19 = vmax.f32 %v107_v12, %v108_v15 }
  0x1c   :  { %v103_v20 = vrot.slane %v102_v16, 2 }
  0x1d   :  { %v90_v21 = vmax.f32 %v88_v13, %v89_v17  ;;  %v97_v22 = vmax.f32 %v95_v14, %v96_v18  ;;  %v110_v23 = vrot.slane %v109_v19, 2 }
  0x1e   :  { %v104_v24 = vmax.f32 %v102_v16, %v103_v20 }
  0x1f   :  { %v91_v25 = vrot.slane %v90_v21, 1  ;;  %v98_v26 = vrot.slane %v97_v22, 1  ;;  %v111_v27 = vmax.f32 %v109_v19, %v110_v23 }
  0x20   :  { %v105_v28 = vrot.slane %v104_v24, 1 }
  0x21   :  { %v92_v29 = vmax.f32 %v90_v21, %v91_v25  ;;  %v99_v30 = vmax.f32 %v97_v22, %v98_v26  ;;  %v112_v31 = vrot.slane %v111_v27, 1 }
  0x22   :  { %v106_v33 = vmax.f32 %v104_v24, %v105_v28 }
  0x23   :  { %v118_v32 = vrot.slane %v99_v30, 4  ;;  %v113_v34 = vmax.f32 %v111_v27, %v112_v31 }
  0x25   :  { %v120_v35 = vsel %vm85_vm0, %v92_v29, %v118_v32  ;;  %v119_v36 = vrot.slane %v113_v34, 4 }
  0x26   :  { %v124_v37 = vsub.f32 %v68_v0, %v120_v35 }
  0x27   :  { %v121_v38 = vsel %vm85_vm0, %v106_v33, %v119_v36 }
  0x28   :  { %v126_v39 = vmul.f32 1.442695, %v124_v37  ;;  %v125_v40 = vsub.f32 %v69_v1, %v121_v38 }
  0x2a   :  { %398 = vpow2.f32 %v126_v39  ;;  %v128_v41 = vmul.f32 1.442695, %v125_v40 }
  0x2c   :  { %400 = vpow2.f32 %v128_v41 }
  0x30   :  { %v583_v42 = vpop.eup %398 }
  0x31   :  { %132 = vst [vmem:[#allocation1] ss:$2 sm:$0xff] %v583_v42 }
  0x32   :  { %v586_v43 = vpop.eup %400 }
  0x33   :  { %136 = vst [vmem:[#allocation1 + $0x10] ss:$2 sm:$0xff] %v586_v43 }
  0x38   :  { %v133_v44 = vld.sshfl [vmem:[#allocation1] sm:$0xff pattern:$0x75316420]  ;;  %v134_v45 = vld.sshfl [vmem:[#allocation1 + $0x8] sm:$0xff pattern:$0x75316420] }
  0x39   :  { %v143_v46 = vsel %vm85_vm0, %v133_v44, 0.0  ;;  %v150_v47 = vsel %vm85_vm0, %v134_v45, 0.0 }
  0x3a   :  { %v144_v48 = vrot.slane %v143_v46, 4  ;;  %v151_v49 = vrot.slane %v150_v47, 4  ;;  %v137_v50 = vld.sshfl [vmem:[#allocation1 + $0x10] sm:$0xff pattern:$0x75316420] }
  0x3b   :  { %v138_v51 = vld.sshfl [vmem:[#allocation1 + $0x18] sm:$0xff pattern:$0x75316420]  ;;  %v157_v52 = vsel %vm85_vm0, %v137_v50, 0.0 }
  0x3c   :  { %v145_v53 = vadd.f32 %v144_v48, %v143_v46  ;;  %v152_v54 = vadd.f32 %v151_v49, %v150_v47  ;;  %v158_v55 = vrot.slane %v157_v52, 4  ;;  %v164_v56 = vsel %vm85_vm0, %v138_v51, 0.0 }
  0x3d   :  { %v165_v57 = vrot.slane %v164_v56, 4 }
  0x3e   :  { %v146_v58 = vrot.slane %v145_v53, 2  ;;  %v153_v59 = vrot.slane %v152_v54, 2  ;;  %v159_v60 = vadd.f32 %v158_v55, %v157_v52 }
  0x3f   :  { %v166_v61 = vadd.f32 %v165_v57, %v164_v56  ;;  %v70_v57 = vld [vmem:[#allocation5] sm:$0xff] }
  0x40   :  { %v147_v62 = vadd.f32 %v146_v58, %v145_v53  ;;  %v154_v63 = vadd.f32 %v153_v59, %v152_v54  ;;  %v160_v0 = vrot.slane %v159_v60, 2 }
  0x41   :  { %v167_v1 = vrot.slane %v166_v61, 2 }
  0x42   :  { %v148_v2 = vrot.slane %v147_v62, 1  ;;  %v155_v3 = vrot.slane %v154_v63, 1  ;;  %v161_v4 = vadd.f32 %v160_v0, %v159_v60 }
  0x43   :  { %v168_v5 = vadd.f32 %v167_v1, %v166_v61  ;;  %v71_v1 = vld [vmem:[#allocation5 + $0x8] sm:$0xff] }
  0x44   :  { %v149_v6 = vadd.f32 %v148_v2, %v147_v62  ;;  %v156_v7 = vadd.f32 %v155_v3, %v154_v63  ;;  %v162_v8 = vrot.slane %v161_v4, 1 }
  0x45   :  { %v169_v9 = vrot.slane %v168_v5, 1 }
  0x46   :  { %402 = vrcp.f32 %v149_v6  ;;  %v163_v10 = vadd.f32 %v162_v8, %v161_v4  ;;  %v180_v12 = vand.u32 2147483647, %v149_v6  ;;  %v182_v13 = vand.u32 2147483648, %v149_v6 }
  0x47   :  { %404 = vrcp.f32 %v156_v7  ;;  %v170_v11 = vadd.f32 %v169_v9, %v168_v5  ;;  %v194_v15 = vand.u32 2147483647, %v156_v7  ;;  %v196_v16 = vand.u32 2147483648, %v156_v7 }
  0x48   :  { %406 = vrcp.f32 %v163_v10  ;;  %vm176_vm1 = vweird.f32 %v149_v6  ;;  %vm190_vm2 = vweird.f32 %v156_v7  ;;  %vm593_vm4 = vcmp.eq.f32.partialorder %v180_v12, 8.507059e+37 }
  0x49   :  { %408 = vrcp.f32 %v170_v11  ;;  %v183_v22 = vor.u32 1.1754944e-38, %v182_v13  ;;  %vm597_vm6 = vcmp.eq.f32.partialorder %v194_v15, 8.507059e+37  ;;  %v197_v26 = vor.u32 1.1754944e-38, %v196_v16 }
  0x4a   :  { %vm204_vm7 = vweird.f32 %v163_v10  ;;  %v208_v30 = vand.u32 2147483647, %v163_v10  ;;  %v210_v33 = vand.u32 2147483648, %v163_v10  ;;  %vm218_vm9 = vweird.f32 %v170_v11 }
  0x4b   :  { %v224_v38 = vand.u32 2147483648, %v170_v11  ;;  %v222_v41 = vand.u32 2147483647, %v170_v11 }
  0x4c   :  { %v403_v14 = vpop.eup %402  ;;  %v211_v48 = vor.u32 1.1754944e-38, %v210_v33  ;;  %vm209_vm15 = vcmp.eq.f32.partialorder %v208_v30, 8.507059e+37  ;;  %v542_v33 = vmov 0.0  }
  0x4d   :  { %v405_v17 = vpop.eup %404  ;;  %v172_v18 = vmul.f32 %v403_v14, %v149_v6  ;;  %vm177_vm3 = vweird.f32 %v403_v14  ;;  %v225_v53 = vor.u32 1.1754944e-38, %v224_v38 }
  0x4e   :  { %v186_v19 = vmul.f32 %v405_v17, %v156_v7  ;;  %v407_v23 = vpop.eup %406  ;;  %vm191_vm5 = vweird.f32 %v405_v17  ;;  %vm602_vm8 = vmor %vm176_vm1, %vm177_vm3  ;;  %vm223_vm1 = vcmp.eq.f32.partialorder %v222_v41, 8.507059e+37  ;;  %vm271_vm3 = vcmask 1041409  }
  0x4f   :  { %v173_v20 = vsub.f32 1.0, %v172_v18  ;;  %v409_v27 = vpop.eup %408  ;;  %v200_v29 = vmul.f32 %v407_v23, %v163_v10  ;;  %vm607_vm10 = vmor %vm190_vm2, %vm191_vm5  ;;  %vm205_vm11 = vweird.f32 %v407_v23  ;;  %vm64_vm2 = vcmask 25600  }
  0x50   :  { %v187_v24 = vsub.f32 1.0, %v186_v19  ;;  %v214_v34 = vmul.f32 %v409_v27, %v170_v11  ;;  %vm219_vm12 = vweird.f32 %v409_v27  ;;  %vm616_vm13 = vmor %vm204_vm7, %vm205_vm11  ;;  %66 = vst.msk [vmem:[#allocation8] sm:$0x3] %vm64_vm2, %v542_v33 }
  0x51   :  { %v174_v28 = vmul.f32 %v403_v14, %v173_v20  ;;  %v201_v37 = vsub.f32 1.0, %v200_v29  ;;  %vm220_vm14 = vmor %vm218_vm9, %vm219_vm12  ;;  %65 = vst.msk [vmem:[#allocation7] sm:$0x3] %vm64_vm2, %v542_v33 }
  0x52   :  { %v188_v32 = vmul.f32 %v405_v17, %v187_v24  ;;  %v215_v40 = vsub.f32 1.0, %v214_v34  ;;  %67 = vst.msk [vmem:[#allocation10] sm:$0x3] %vm64_vm2, %v542_v33  ;;  %v267_v34 = vlaneseq }
  0x53   :  { %v175_v35 = vadd.f32 %v403_v14, %v174_v28  ;;  %v202_v45 = vmul.f32 %v407_v23, %v201_v37 }
  0x54   :  { %v189_v39 = vadd.f32 %v405_v17, %v188_v32  ;;  %v216_v49 = vmul.f32 %v409_v27, %v215_v40  ;;  %v268_v36 = vand.u32 127, %v267_v34 }
  0x55   :  { %v179_v44 = vsel %vm602_vm8, %v403_v14, %v175_v35  ;;  %v203_v52 = vadd.f32 %v407_v23, %v202_v45 }
  0x56   :  { %v193_v46 = vsel %vm607_vm10, %v405_v17, %v189_v39  ;;  %v184_v50 = vsel %vm593_vm4, %v183_v22, %v179_v44  ;;  %v217_v55 = vadd.f32 %v409_v27, %v216_v49 }
  0x57   :  { %v198_v51 = vsel %vm597_vm6, %v197_v26, %v193_v46  ;;  %v207_v56 = vsel %vm616_vm13, %v407_v23, %v203_v52  ;;  %v277_v49 = vld [vmem:[#allocation8] sm:$0x3] }
  0x58   :  { %v231_v54 = vrot.slane %v198_v51, 4  ;;  %v221_v59 = vsel %vm220_vm14, %v409_v27, %v217_v55  ;;  %v212_v61 = vsel %vm209_vm15, %v211_v48, %v207_v56  ;;  %v239_v40 = vld [vmem:[#allocation7] sm:$0x3] }
  0x59   :  { %v226_v62 = vsel %vm223_vm1, %v225_v53, %v221_v59  ;;  %v309_v55 = vld [vmem:[#allocation10] sm:$0x3] }
  0x5a   :  { %v233_v58 = vsel %vm85_vm0, %v184_v50, %v231_v54  ;;  %v232_v63 = vrot.slane %v226_v62, 4 }
  0x5b   :  { %v237_v60 = vmul.f32 %v583_v42, %v233_v58 }
  0x5c   :  { %v234_v2 = vsel %vm85_vm0, %v212_v61, %v232_v63 }
  0x5d   :  { %v240_v0 = vmul.f32 %v237_v60, %v70_v57  ;;  %v238_v3 = vmul.f32 %v586_v43, %v234_v2 }
  0x5f   :  { %244 = vst [vmem:[#allocation1] ss:$2 sm:$0xff] %v240_v0  ;;  %v241_v4 = vmul.f32 %v238_v3, %v71_v1 }
  0x61   :  { %248 = vst [vmem:[#allocation1 + $0x10] ss:$2 sm:$0xff] %v241_v4 }
  0x66   :  { %v245_v5 = vld.sshfl [vmem:[#allocation1] sm:$0xff pattern:$0x75316420]  ;;  %v246_v6 = vld.sshfl [vmem:[#allocation1 + $0x8] sm:$0xff pattern:$0x75316420] }
  0x67   :  { %280 = vst [vmem:[#allocation1] ss:$2 sm:$0xff] %v237_v60  ;;  %v255_v7 = vsel %vm85_vm0, %v245_v5, 0.0  ;;  %v256_v8 = vsel %vm85_vm0, %v246_v6, 0.0 }
  0x68   :  { %v257_v42 = vadd.f32 %v256_v8, %v255_v7  ;;  %v249_v9 = vld.sshfl [vmem:[#allocation1 + $0x10] sm:$0xff pattern:$0x75316420]  ;;  %v250_v10 = vld.sshfl [vmem:[#allocation1 + $0x18] sm:$0xff pattern:$0x75316420] }
  0x69   :  { %284 = vst [vmem:[#allocation1 + $0x10] ss:$2 sm:$0xff] %v238_v3  ;;  %v260_v11 = vsel %vm85_vm0, %v249_v9, 0.0  ;;  %v261_v12 = vsel %vm85_vm0, %v250_v10, 0.0 }
  0x6a   :  { %258 = vadd.xlane.f32.xlu1 %v257_v42  ;;  %v262_v14 = vadd.f32 %v261_v12, %v260_v11 }
  0x6e   :  { %v281_v13 = vld.sshfl [vmem:[#allocation1] sm:$0xff pattern:$0x75316420]  ;;  %v282_v43 = vld.sshfl [vmem:[#allocation1 + $0x8] sm:$0xff pattern:$0x75316420] }
  0x6f   :  { %v291_v15 = vsel %vm85_vm0, %v281_v13, 0.0  ;;  %v292_v16 = vsel %vm85_vm0, %v282_v43, 0.0  ;;  %312 = vst [vmem:[#allocation1] ss:$2 sm:$0xff] %v70_v57 }
  0x70   :  { %v293_v17 = vadd.f32 %v292_v16, %v291_v15  ;;  %v285_v18 = vld.sshfl [vmem:[#allocation1 + $0x10] sm:$0xff pattern:$0x75316420]  ;;  %v286_v19 = vld.sshfl [vmem:[#allocation1 + $0x18] sm:$0xff pattern:$0x75316420] }
  0x71   :  { %v296_v20 = vsel %vm85_vm0, %v285_v18, 0.0  ;;  %v297_v21 = vsel %vm85_vm0, %v286_v19, 0.0  ;;  %316 = vst [vmem:[#allocation1 + $0x10] ss:$2 sm:$0xff] %v71_v1 }
  0x72   :  { %294 = vadd.xlane.f32.xlu0 %v293_v17  ;;  %263 = vadd.xlane.f32.xlu1 %v262_v14  ;;  %v298_v24 = vadd.f32 %v297_v21, %v296_v20 }
  0x76   :  { %v313_v22 = vld.sshfl [vmem:[#allocation1] sm:$0xff pattern:$0x75316420]  ;;  %v314_v23 = vld.sshfl [vmem:[#allocation1 + $0x8] sm:$0xff pattern:$0x75316420] }
  0x77   :  { %v323_v25 = vsel %vm85_vm0, %v313_v22, 0.0  ;;  %v324_v26 = vsel %vm85_vm0, %v314_v23, 0.0 }
  0x78   :  { %v325_v27 = vadd.f32 %v324_v26, %v323_v25  ;;  %v317_v28 = vld.sshfl [vmem:[#allocation1 + $0x10] sm:$0xff pattern:$0x75316420]  ;;  %v318_v29 = vld.sshfl [vmem:[#allocation1 + $0x18] sm:$0xff pattern:$0x75316420] }
  0x79   :  { %v328_v30 = vsel %vm85_vm0, %v317_v28, 0.0  ;;  %v329_v31 = vsel %vm85_vm0, %v318_v29, 0.0 }
  0x7a   :  { %326 = vadd.xlane.f32.xlu2 %v325_v27  ;;  %299 = vadd.xlane.f32.xlu0 %v298_v24  ;;  %v330_v32 = vadd.f32 %v329_v31, %v328_v30 }
  0x82   :  { %331 = vadd.xlane.f32.xlu2 %v330_v32 }
  0xdd   :  { %v259_v35 = vpop.xlane.xlu1 %258 }
  0xde   :  { %v269_v37 = vperm.slane %v259_v35, %v268_v36 }
  0xe5   :  { %v295_v38 = vpop.xlane.xlu0 %294  ;;  %v264_v39 = vpop.xlane.xlu1 %263 }
  0xe6   :  { %v270_v41 = vperm.slane %v264_v39, %v268_v36  ;;  %v303_v46 = vperm.slane %v295_v38, %v268_v36 }
  0xe8   :  { %v272_v44 = vsel %vm271_vm3, %v270_v41, %v269_v37 }
  0xe9   :  { %v274_v45 = vadd.f32 %v272_v44, %v239_v40 }
  0xeb   :  { %276 = vst.msk [vmem:[#allocation7] sm:$0x3] %vm64_vm2, %v274_v45 }
  0xec   :  { %351 = dma.vmem_to_hbm [thread:$0]  %s347_s1, 32, %s349_s29, [#allocation4]  }
  0xed   :  { %v327_v47 = vpop.xlane.xlu2 %326  ;;  %v300_v48 = vpop.xlane.xlu0 %299 }
  0xee   :  { %v304_v50 = vperm.slane %v300_v48, %v268_v36  ;;  %v335_v54 = vperm.slane %v327_v47, %v268_v36 }
  0xf0   :  { %v305_v51 = vsel %vm271_vm3, %v304_v50, %v303_v46 }
  0xf1   :  { %v307_v52 = vadd.f32 %v305_v51, %v277_v49 }
  0xf3   :  { %308 = vst.msk [vmem:[#allocation8] sm:$0x3] %vm64_vm2, %v307_v52 }
  0xf4   :  { %362 = dma.vmem_to_hbm [thread:$0]  %s358_s5, 32, %s360_s8, [#allocation9]  }
  0xf5   :  { %v332_v53 = vpop.xlane.xlu2 %331 }
  0xf6   :  { %v336_v56 = vperm.slane %v332_v53, %v268_v36 }
  0xf8   :  { %v337_v57 = vsel %vm271_vm3, %v336_v56, %v335_v54 }
  0xf9   :  { %v339_v58 = vadd.f32 %v337_v57, %v309_v55 }
  0xfb   :  { %340 = vst.msk [vmem:[#allocation10] sm:$0x3] %vm64_vm2, %v339_v58 }
  0xfc   :  { %373 = dma.vmem_to_hbm [thread:$0]  %s369_s9, 32, %s371_s12, [#allocation9]  }
  0xfd   :  { %534 = dma.done.wait [#allocation4], 32  }
  0xfe   :  { %535 = vsyncadd [#allocation4], 4294967264 }
  0xff   :  { %536 = dma.done.wait [#allocation9], 64  }
 0x100   :  { %537 = vsyncadd [#allocation9], 4294967232 }
 0x101   :  { %386 = vsyncpa [#allocation3], 1 }
 0x102   :  { %387 = vsyncpa [#allocation6], 1 }
 0x103   :  { %388 = vsyncpa [#allocation4], 1 }
 0x104   :  { %389 = vsyncpa [#allocation9], 1 }

</bundles_post_ra>
